<compile_context>
chip_gen: v7x
topology: tpu7x:2x2x1
jax: 0.10.0
libtpu: 0.0.40
codegen_flags: <defaults>
</compile_context>

<pallas_src>
import math
from functools import partial

import numpy as np
import jax
import jax.numpy as jnp
from jax.experimental import pallas as pl
from jax.experimental.pallas import tpu as pltpu

QUANTILE_EMBEDDING_DIM = 64   # global constant in the reference IQN repo
HIDDEN = 128


def _ceil_div(a, b):
    return -(-a // b)


def _round_up(a, b):
    return _ceil_div(a, b) * b


def _use_bf16_product():
    """bf16 VALU exists on v6e/v7x; keep f32 elementwise math on v5e & older."""
    try:
        kind = jax.devices()[0].device_kind.lower()
    except Exception:
        return False
    return any(tag in kind for tag in ("v6", "v7", "7x"))


def _iqn_kernel(tau_ref, pi_ref, state_ref, w1_ref, b1_ref,
                wphi_ref, bphi_ref, w2_ref, b2_ref, out_ref,
                *, bf16_product):
    # tau_ref:   (R, 1)   f32  per-(row, quantile) samples for this tile
    # pi_ref:    (1, E)   f32  pi * arange(quantile_embedding_dim)
    # state_ref: (BR, I)  f32  state rows replicated with period B (BR=lcm(16,B))
    # w1_ref:    (I, H)   f32 ; b1_ref:  (1, H) f32
    # wphi_ref:  (E, H)   bf16; bphi_ref:(1, H) f32
    # w2_ref:    (H, O)   bf16; b2_ref:  (1, O) f32
    # out_ref:   (R, O)   f32
    R = tau_ref.shape[0]
    BR, I = state_ref.shape
    reps = R // BR
    f32, bf16 = jnp.float32, jnp.bfloat16

    # ---- fc1 on the VPU, recomputed every grid step (no persistent scratch /
    # pl.when(i==0) pattern, so it is safe under "parallel" megacore on v7x).
    h = b1_ref[...] + state_ref[:, 0:1] * w1_ref[0:1, :]
    for k in range(1, I):                                  # static unroll, I is tiny
        h = h + state_ref[:, k:k + 1] * w1_ref[k:k + 1, :]
    h = jnp.maximum(h, 0.0)                                # (BR, H) f32

    # ---- quantile embedding: phi = relu(cos(tau * pi*arange(E)) @ Wphi + b).
    # K = E = 64 on the MXU is left unpadded (padding only adds work).
    cos_tau = jnp.cos(tau_ref[...] * pi_ref[...])          # (R, E) f32
    phi = jnp.dot(cos_tau.astype(wphi_ref.dtype), wphi_ref[...],
                  preferred_element_type=f32) + bphi_ref[...]
    phi = jnp.maximum(phi, 0.0)                            # (R, H) f32

    # ---- replicate h to the R rows of this tile with WHOLE-vreg copies only:
    # BR is a multiple of 16 (full bf16 vreg of sublanes / 2 f32 vregs), so the
    # concatenate is plain vreg placement, not sub-vreg shuffles.
    if bf16_product:
        h_rows = h.astype(bf16)                            # bf16 VALU path (v6e/v7x)
        if reps > 1:
            h_rows = jnp.concatenate([h_rows] * reps, axis=0)   # (R, H)
        prod = h_rows * phi.astype(bf16)                   # bf16 product -> fc2 GEMM
    else:
        h_rows = h                                         # f32 VALU path (v5e)
        if reps > 1:
            h_rows = jnp.concatenate([h_rows] * reps, axis=0)
        prod = (h_rows * phi).astype(w2_ref.dtype)         # round once before GEMM

    # ---- fc2.  O=2 keeps the output lane-sparse; the (R, 2) masked stores are
    # only R/8 vst.msk per tile and are accepted here.
    # TODO(synk): at very large N, emit a transposed lane-dense (O, Np) output
    # via two lane-reductions on the otherwise idle XLU, per the perf review.
    out = jnp.dot(prod, w2_ref[...], preferred_element_type=f32) + b2_ref[...]
    out_ref[...] = out.astype(out_ref.dtype)


def iqn_forward(state, tau, num_quantiles, params):
    """Pallas implementation of IQN.forward(state, tau, num_quantiles)."""
    B, I = state.shape
    H = params["w1"].shape[1]
    O = params["w2"].shape[1]
    E = params["wphi"].shape[0]
    Q = num_quantiles
    N = B * Q
    # PyTorch `state.expand(B, Q, I)` is only valid when B == Q or B == 1.
    assert B == Q or B == 1, "expand() needs batch == num_quantiles or batch == 1"

    f32, bf16 = jnp.float32, jnp.bfloat16
    bf16_product = _use_bf16_product()

    # Row n of the flattened (B*Q) problem uses state[n % B] (quirky torch
    # expand semantics).  Pre-replicate state to BR = lcm(16, B) rows so all
    # in-kernel replication is whole-vreg aligned for both bf16 and f32.
    BR = 16 * B // math.gcd(16, B)
    state_rep = jnp.tile(state.astype(f32), (BR // B, 1))          # (BR, I)

    # Row tiling: one grid step for small problems; ~512-row tiles (and >= 2
    # "parallel" steps so both v7x TensorCores get work) for larger N.
    n_al = _round_up(N, BR)
    if n_al <= 512:
        R = n_al
    else:
        R = min(_round_up(512, BR), _round_up(_ceil_div(n_al, 2), BR))
    num_tiles = _ceil_div(N, R)
    Np = num_tiles * R

    tau_f = tau.astype(f32).reshape(N, 1)
    if Np != N:
        # Padding rows produce harmless garbage that is sliced off below.
        tau_f = jnp.pad(tau_f, ((0, Np - N), (0, 0)))

    pi_row = (jnp.pi * jnp.arange(E, dtype=f32))[None, :]          # (1, E)

    w1 = params["w1"].astype(f32)           # (I, H)  used on the VPU in f32
    b1 = params["b1"].astype(f32)           # (1, H)
    wphi = params["wphi"].astype(bf16)      # (E, H)
    bphi = params["bphi"].astype(f32)       # (1, H)
    w2 = params["w2"].astype(bf16)          # (H, O)
    b2 = params["b2"].astype(f32)           # (1, O)

    out = pl.pallas_call(
        partial(_iqn_kernel, bf16_product=bf16_product),
        out_shape=jax.ShapeDtypeStruct((Np, O), f32),
        grid_spec=pltpu.PrefetchScalarGridSpec(
            num_scalar_prefetch=0,
            grid=(num_tiles,),
            in_specs=[
                pl.BlockSpec((R, 1), lambda i: (i, 0)),    # tau rows
                pl.BlockSpec((1, E), lambda i: (0, 0)),    # pi * arange(E)
                pl.BlockSpec((BR, I), lambda i: (0, 0)),   # replicated state rows
                pl.BlockSpec((I, H), lambda i: (0, 0)),    # W1
                pl.BlockSpec((1, H), lambda i: (0, 0)),    # b1
                pl.BlockSpec((E, H), lambda i: (0, 0)),    # W_phi
                pl.BlockSpec((1, H), lambda i: (0, 0)),    # b_phi
                pl.BlockSpec((H, O), lambda i: (0, 0)),    # W_fc2
                pl.BlockSpec((1, O), lambda i: (0, 0)),    # b_fc2
            ],
            out_specs=pl.BlockSpec((R, O), lambda i: (i, 0)),
        ),
        compiler_params=pltpu.CompilerParams(
            dimension_semantics=("parallel",)),
    )(tau_f, pi_row, state_rep, w1, b1, wphi, bphi, w2, b2)

    x = out if Np == N else out[:N, :]                     # drop row padding (if any)
    # TODO(synk): the final reshape/transpose stays as XLA glue; emitting the
    # (B, num_outputs, Q) layout directly from the kernel would require an
    # in-kernel transpose of the lane-sparse O=2 result.
    z = x.reshape(B, Q, O).transpose(0, 2, 1)              # (B, num_outputs, Q)
    return z


def iqn_reference(state, tau, num_quantiles, params, *, matmul_dtype=jnp.float32,
                  bf16_product=False):
    """Pure-JAX reference mirroring the PyTorch forward, for validation.

    matmul_dtype=bfloat16 (+ bf16_product matching the kernel's device path)
    mirrors the kernel's mixed-precision numerics; defaults are module f32.
    """
    B, I = state.shape
    Q = num_quantiles
    N = B * Q
    E = params["wphi"].shape[0]
    f32 = jnp.float32
    dt = matmul_dtype

    pi_mtx = jnp.pi * jnp.arange(E, dtype=f32)
    cos_tau = jnp.cos(tau.astype(f32).reshape(N, 1) * pi_mtx[None, :])   # (N, E)
    phi = jnp.dot(cos_tau.astype(dt), params["wphi"].astype(dt),
                  preferred_element_type=f32) + params["bphi"]
    phi = jax.nn.relu(phi)                                               # (N, H)

    h = jax.nn.relu(state.astype(f32) @ params["w1"] + params["b1"])     # (B, H)
    # Same quirky torch expand(): result[b, q, :] = h[q, :] (B==Q) or h[0, :].
    h_rows = jnp.broadcast_to(h, (B, Q, h.shape[1])).reshape(N, -1)
    if bf16_product:
        prod = h_rows.astype(jnp.bfloat16) * phi.astype(jnp.bfloat16)
    else:
        prod = h_rows * phi
    x = jnp.dot(prod.astype(dt), params["w2"].astype(dt),
                preferred_element_type=f32) + params["b2"]               # (N, O)
    return x.reshape(B, Q, -1).transpose(0, 2, 1)


def init_params(keys, num_inputs, num_outputs, hidden=HIDDEN,
                emb=QUANTILE_EMBEDDING_DIM):
    """xavier_uniform weights (as in the module), PyTorch-default biases.
    Stored as (in, out)."""
    def xavier(key, fan_in, fan_out):
        lim = float(np.sqrt(6.0 / (fan_in + fan_out)))
        return jax.random.uniform(key, (fan_in, fan_out), jnp.float32, -lim, lim)

    def bias(key, fan_in, n):
        b = float(1.0 / np.sqrt(fan_in))
        return jax.random.uniform(key, (1, n), jnp.float32, -b, b)

    return dict(
        w1=xavier(keys[0], num_inputs, hidden), b1=bias(keys[1], num_inputs, hidden),
        w2=xavier(keys[2], hidden, num_outputs), b2=bias(keys[3], hidden, num_outputs),
        wphi=xavier(keys[4], emb, hidden), bphi=bias(keys[5], emb, hidden),
    )


if __name__ == "__main__":
    num_inputs, num_outputs = 4, 2          # CartPole-like
    batch = 4
    num_quantiles = 4                       # expand() requires batch == Q or batch == 1

    key = jax.random.PRNGKey(0)
    k_state, k_tau, *k_params = jax.random.split(key, 8)

    state = jax.random.normal(k_state, (batch, num_inputs), dtype=jnp.float32)
    tau = jax.random.uniform(k_tau, (batch * num_quantiles, 1), dtype=jnp.float32)
    params = init_params(k_params, num_inputs, num_outputs)

    fwd = jax.jit(iqn_forward, static_argnums=2)
    z = fwd(state, tau, num_quantiles, params)
    jax.block_until_ready(z)

    bf16_prod = _use_bf16_product()
    z_ref_matched = iqn_reference(state, tau, num_quantiles, params,
                                  matmul_dtype=jnp.bfloat16,
                                  bf16_product=bf16_prod)     # numerics-matched
    z_ref_f32 = iqn_reference(state, tau, num_quantiles, params)  # module semantics

    assert z.shape == (batch, num_outputs, num_quantiles), z.shape
    assert jnp.allclose(z, z_ref_matched, atol=1e-2, rtol=1e-2), \
        float(jnp.max(jnp.abs(z - z_ref_matched)))
    assert jnp.allclose(z, z_ref_f32, atol=5e-2, rtol=5e-2), \
        float(jnp.max(jnp.abs(z - z_ref_f32)))
    # TODO(synk): get_action / train_model are host-side RL training logic, not
    # part of the module forward pass, and are intentionally not kernelized.
    print("KERNEL_OK")
</pallas_src>

<mosaic_0001>
module attributes {stable_mosaic.version = 11 : i64} {
  func.func @_iqn_kernel(%arg0: i32, %arg1: memref<16x1xf32, #tpu.memory_space<vmem>>, %arg2: memref<1x64xf32, #tpu.memory_space<vmem>>, %arg3: memref<16x4xf32, #tpu.memory_space<vmem>>, %arg4: memref<4x128xf32, #tpu.memory_space<vmem>>, %arg5: memref<1x128xf32, #tpu.memory_space<vmem>>, %arg6: memref<64x128xbf16, #tpu.memory_space<vmem>>, %arg7: memref<1x128xf32, #tpu.memory_space<vmem>>, %arg8: memref<128x2xbf16, #tpu.memory_space<vmem>>, %arg9: memref<1x2xf32, #tpu.memory_space<vmem>>, %arg10: memref<16x2xf32, #tpu.memory_space<vmem>>) attributes {dimension_semantics = [#tpu.dimension_semantics<parallel>], iteration_bounds = array<i64: 1>, scalar_prefetch = 0 : i64, scratch_operands = 0 : i64, tpu.core_type = #tpu.core_type<tc>, window_params = [{transform_indices = @transform_0, window_bounds = array<i64: 16, 1>}, {pipeline_mode = #tpu.pipeline_mode<synchronous>, transform_indices = @transform_1, window_bounds = array<i64: 1, 64>}, {pipeline_mode = #tpu.pipeline_mode<synchronous>, transform_indices = @transform_2, window_bounds = array<i64: 16, 4>}, {pipeline_mode = #tpu.pipeline_mode<synchronous>, transform_indices = @transform_3, window_bounds = array<i64: 4, 128>}, {pipeline_mode = #tpu.pipeline_mode<synchronous>, transform_indices = @transform_4, window_bounds = array<i64: 1, 128>}, {pipeline_mode = #tpu.pipeline_mode<synchronous>, transform_indices = @transform_5, window_bounds = array<i64: 64, 128>}, {pipeline_mode = #tpu.pipeline_mode<synchronous>, transform_indices = @transform_6, window_bounds = array<i64: 1, 128>}, {pipeline_mode = #tpu.pipeline_mode<synchronous>, transform_indices = @transform_7, window_bounds = array<i64: 128, 2>}, {pipeline_mode = #tpu.pipeline_mode<synchronous>, transform_indices = @transform_8, window_bounds = array<i64: 1, 2>}, {transform_indices = @transform_9, window_bounds = array<i64: 16, 2>}]} {
    %c0 = arith.constant 0 : index
    %c0_0 = arith.constant 0 : index
    %0 = vector.load %arg5[%c0, %c0_0] : memref<1x128xf32, #tpu.memory_space<vmem>>, vector<1x128xf32>
    %c0_1 = arith.constant 0 : index
    %c0_2 = arith.constant 0 : index
    %1 = vector.load %arg3[%c0_1, %c0_2] : memref<16x4xf32, #tpu.memory_space<vmem>>, vector<16x1xf32>
    %c0_3 = arith.constant 0 : index
    %c0_4 = arith.constant 0 : index
    %2 = vector.load %arg4[%c0_3, %c0_4] : memref<4x128xf32, #tpu.memory_space<vmem>>, vector<1x128xf32>
    %3 = vector.broadcast %1 : vector<16x1xf32> to vector<16x128xf32>
    %4 = vector.broadcast %2 : vector<1x128xf32> to vector<16x128xf32>
    %5 = arith.mulf %3, %4 : vector<16x128xf32>
    %6 = vector.broadcast %0 : vector<1x128xf32> to vector<16x128xf32>
    %7 = arith.addf %6, %5 : vector<16x128xf32>
    %c0_5 = arith.constant 0 : index
    %c1 = arith.constant 1 : index
    %8 = vector.load %arg3[%c0_5, %c1] : memref<16x4xf32, #tpu.memory_space<vmem>>, vector<16x1xf32>
    %c1_6 = arith.constant 1 : index
    %c0_7 = arith.constant 0 : index
    %9 = vector.load %arg4[%c1_6, %c0_7] : memref<4x128xf32, #tpu.memory_space<vmem>>, vector<1x128xf32>
    %10 = vector.broadcast %8 : vector<16x1xf32> to vector<16x128xf32>
    %11 = vector.broadcast %9 : vector<1x128xf32> to vector<16x128xf32>
    %12 = arith.mulf %10, %11 : vector<16x128xf32>
    %13 = arith.addf %7, %12 : vector<16x128xf32>
    %c0_8 = arith.constant 0 : index
    %c2 = arith.constant 2 : index
    %14 = vector.load %arg3[%c0_8, %c2] : memref<16x4xf32, #tpu.memory_space<vmem>>, vector<16x1xf32>
    %c2_9 = arith.constant 2 : index
    %c0_10 = arith.constant 0 : index
    %15 = vector.load %arg4[%c2_9, %c0_10] : memref<4x128xf32, #tpu.memory_space<vmem>>, vector<1x128xf32>
    %16 = vector.broadcast %14 : vector<16x1xf32> to vector<16x128xf32>
    %17 = vector.broadcast %15 : vector<1x128xf32> to vector<16x128xf32>
    %18 = arith.mulf %16, %17 : vector<16x128xf32>
    %19 = arith.addf %13, %18 : vector<16x128xf32>
    %c0_11 = arith.constant 0 : index
    %c3 = arith.constant 3 : index
    %20 = vector.load %arg3[%c0_11, %c3] : memref<16x4xf32, #tpu.memory_space<vmem>>, vector<16x1xf32>
    %c3_12 = arith.constant 3 : index
    %c0_13 = arith.constant 0 : index
    %21 = vector.load %arg4[%c3_12, %c0_13] : memref<4x128xf32, #tpu.memory_space<vmem>>, vector<1x128xf32>
    %22 = vector.broadcast %20 : vector<16x1xf32> to vector<16x128xf32>
    %23 = vector.broadcast %21 : vector<1x128xf32> to vector<16x128xf32>
    %24 = arith.mulf %22, %23 : vector<16x128xf32>
    %25 = arith.addf %19, %24 : vector<16x128xf32>
    %cst = arith.constant 0.000000e+00 : f32
    %26 = vector.broadcast %cst : f32 to vector<16x128xf32>
    %27 = arith.maximumf %25, %26 : vector<16x128xf32>
    %c0_14 = arith.constant 0 : index
    %c0_15 = arith.constant 0 : index
    %28 = vector.load %arg1[%c0_14, %c0_15] : memref<16x1xf32, #tpu.memory_space<vmem>>, vector<16x1xf32>
    %c0_16 = arith.constant 0 : index
    %c0_17 = arith.constant 0 : index
    %29 = vector.load %arg2[%c0_16, %c0_17] : memref<1x64xf32, #tpu.memory_space<vmem>>, vector<1x64xf32>
    %30 = vector.broadcast %28 : vector<16x1xf32> to vector<16x64xf32>
    %31 = vector.broadcast %29 : vector<1x64xf32> to vector<16x64xf32>
    %32 = arith.mulf %30, %31 : vector<16x64xf32>
    %33 = math.cos %32 : vector<16x64xf32>
    %34 = arith.truncf %33 : vector<16x64xf32> to vector<16x64xbf16>
    %c0_18 = arith.constant 0 : index
    %c0_19 = arith.constant 0 : index
    %35 = vector.load %arg6[%c0_18, %c0_19] : memref<64x128xbf16, #tpu.memory_space<vmem>>, vector<64x128xbf16>
    %cst_20 = arith.constant dense<0.000000e+00> : vector<16x128xf32>
    %36 = tpu.matmul %34, %35, %cst_20 {dimension_numbers = #tpu.dot_dimension_numbers<[1], [0], [0], [1], [0, 0, 1, 1], [], []>} : vector<16x64xbf16>, vector<64x128xbf16>, vector<16x128xf32> -> vector<16x128xf32>
    %c0_21 = arith.constant 0 : index
    %c0_22 = arith.constant 0 : index
    %37 = vector.load %arg7[%c0_21, %c0_22] : memref<1x128xf32, #tpu.memory_space<vmem>>, vector<1x128xf32>
    %38 = vector.broadcast %37 : vector<1x128xf32> to vector<16x128xf32>
    %39 = arith.addf %36, %38 : vector<16x128xf32>
    %cst_23 = arith.constant 0.000000e+00 : f32
    %40 = vector.broadcast %cst_23 : f32 to vector<16x128xf32>
    %41 = arith.maximumf %39, %40 : vector<16x128xf32>
    %42 = arith.mulf %27, %41 : vector<16x128xf32>
    %43 = arith.truncf %42 : vector<16x128xf32> to vector<16x128xbf16>
    %c0_24 = arith.constant 0 : index
    %c0_25 = arith.constant 0 : index
    %44 = vector.load %arg8[%c0_24, %c0_25] : memref<128x2xbf16, #tpu.memory_space<vmem>>, vector<128x2xbf16>
    %cst_26 = arith.constant dense<0.000000e+00> : vector<16x2xf32>
    %45 = tpu.matmul %43, %44, %cst_26 {dimension_numbers = #tpu.dot_dimension_numbers<[1], [0], [0], [1], [0, 0, 1, 1], [], []>} : vector<16x128xbf16>, vector<128x2xbf16>, vector<16x2xf32> -> vector<16x2xf32>
    %c0_27 = arith.constant 0 : index
    %c0_28 = arith.constant 0 : index
    %46 = vector.load %arg9[%c0_27, %c0_28] : memref<1x2xf32, #tpu.memory_space<vmem>>, vector<1x2xf32>
    %47 = vector.broadcast %46 : vector<1x2xf32> to vector<16x2xf32>
    %48 = arith.addf %45, %47 : vector<16x2xf32>
    %c0_29 = arith.constant 0 : index
    %c0_30 = arith.constant 0 : index
    %49 = vector.load %arg10[%c0_29, %c0_30] : memref<16x2xf32, #tpu.memory_space<vmem>>, vector<16x2xf32>
    tpu.vector_store %arg10[%c0_29, %c0_30], %48 {strides = array<i32>} : memref<16x2xf32, #tpu.memory_space<vmem>>, vector<16x2xf32>,
    return
  }
  func.func @transform_0(%arg0: i32) -> (i32, i32) {
    %c0_i32 = arith.constant 0 : i32
    %c0_i32_0 = arith.constant 0 : i32
    return %arg0, %c0_i32 : i32, i32
  }
  func.func @transform_1(%arg0: i32) -> (i32, i32) {
    %c0_i32 = arith.constant 0 : i32
    %c0_i32_0 = arith.constant 0 : i32
    %c0_i32_1 = arith.constant 0 : i32
    return %c0_i32, %c0_i32_0 : i32, i32
  }
  func.func @transform_2(%arg0: i32) -> (i32, i32) {
    %c0_i32 = arith.constant 0 : i32
    %c0_i32_0 = arith.constant 0 : i32
    %c0_i32_1 = arith.constant 0 : i32
    return %c0_i32, %c0_i32_0 : i32, i32
  }
  func.func @transform_3(%arg0: i32) -> (i32, i32) {
    %c0_i32 = arith.constant 0 : i32
    %c0_i32_0 = arith.constant 0 : i32
    %c0_i32_1 = arith.constant 0 : i32
    return %c0_i32, %c0_i32_0 : i32, i32
  }
  func.func @transform_4(%arg0: i32) -> (i32, i32) {
    %c0_i32 = arith.constant 0 : i32
    %c0_i32_0 = arith.constant 0 : i32
    %c0_i32_1 = arith.constant 0 : i32
    return %c0_i32, %c0_i32_0 : i32, i32
  }
  func.func @transform_5(%arg0: i32) -> (i32, i32) {
    %c0_i32 = arith.constant 0 : i32
    %c0_i32_0 = arith.constant 0 : i32
    %c0_i32_1 = arith.constant 0 : i32
    return %c0_i32, %c0_i32_0 : i32, i32
  }
  func.func @transform_6(%arg0: i32) -> (i32, i32) {
    %c0_i32 = arith.constant 0 : i32
    %c0_i32_0 = arith.constant 0 : i32
    %c0_i32_1 = arith.constant 0 : i32
    return %c0_i32, %c0_i32_0 : i32, i32
  }
  func.func @transform_7(%arg0: i32) -> (i32, i32) {
    %c0_i32 = arith.constant 0 : i32
    %c0_i32_0 = arith.constant 0 : i32
    %c0_i32_1 = arith.constant 0 : i32
    return %c0_i32, %c0_i32_0 : i32, i32
  }
  func.func @transform_8(%arg0: i32) -> (i32, i32) {
    %c0_i32 = arith.constant 0 : i32
    %c0_i32_0 = arith.constant 0 : i32
    %c0_i32_1 = arith.constant 0 : i32
    return %c0_i32, %c0_i32_0 : i32, i32
  }
  func.func @transform_9(%arg0: i32) -> (i32, i32) {
    %c0_i32 = arith.constant 0 : i32
    %c0_i32_0 = arith.constant 0 : i32
    return %arg0, %c0_i32 : i32, i32
  }
}

</mosaic_0001>

<bundles_post_ra>
// kernel: iqn_forward.1
= control target key start
LH: loop header
LB: loop body
LE: loop exit
PB: predicated region body
PF: predicated region fallthrough
CT: control target
= control target key end

     0   :  { %v673_v0 = vmov 0   ;;  %v674_v3 = vmov 0.0   ;;  %vm675_vm0 = vmmov 0   ;;  %v676_v9 = vmov 1   ;;  %s904_s0 = inlined_call_operand.vmem [shape: f32[16,1], index: 0, kind: input, shape index: {}]   ;;  %s905_s5 = inlined_call_operand.vmem [shape: bf16[64,128], index: 5, kind: input, shape index: {}]   ;;  %s906_s2 = inlined_call_operand.vmem [shape: f32[16,4], index: 2, kind: input, shape index: {}]   ;;  %s907_s1 = inlined_call_operand.vmem [shape: f32[1,64], index: 1, kind: input, shape index: {}]   ;;  %s908_s7 = inlined_call_operand.vmem [shape: bf16[128,2], index: 7, kind: input, shape index: {}]   ;;  %s909_s3 = inlined_call_operand.vmem [shape: f32[4,128], index: 3, kind: input, shape index: {}]   ;;  %s910_s4 = inlined_call_operand.vmem [shape: f32[1,128], index: 4, kind: input, shape index: {}]   ;;  %s911_s6 = inlined_call_operand.vmem [shape: f32[1,128], index: 6, kind: input, shape index: {}]   ;;  %s912_s8 = inlined_call_operand.vmem [shape: f32[1,2], index: 8, kind: input, shape index: {}]   ;;  %s913_s9 = inlined_call_operand.vmem [shape: f32[16,2], index: 9, kind: output, shape index: {}]  }
   0x1   :  { %645 = vset.pattern.permute.xlu0 %v673_v0  ;;  %v114_v1 = vld [vmem:[%s904_s0] sm:$0xff]  ;;  %646 = vset.pattern.permute.xlu1 %v673_v0  ;;  %v115_v2 = vld [vmem:[%s904_s0 + $0x8] sm:$0xff]  ;;  %v655_v6 = vld [vmem:[%s905_s5 + $0x10] sm:$0xff]   ;;  %v677_v11 = vmov 2   ;;  %v678_v12 = vmov 3  }
   0x2   :  { %119 = vperm.xlu0 %645, %v114_v1   ;;  %593 = vmatprep.subr.bf16.mxu0 %v674_v3  ;;  %v653_v4 = vld [vmem:[%s905_s5] sm:$0xff]   ;;  %v654_v5 = vld [vmem:[%s905_s5 + $0x8] sm:$0xff]   ;;  %v656_v7 = vld [vmem:[%s905_s5 + $0x18] sm:$0xff]   ;;  %v679_v39 = vmov 683565275  }
   0x3   :  { %601 = vmatprep.mubr.msk.bf16.mxu0 %vm675_vm0, %v674_v3  ;;  %605 = vmatprep.subr.bf16.mxu1 %v674_v3  ;;  %v34_v8 = vld [vmem:[%s906_s2] sm:$0xff]  ;;  %v35_v10 = vld [vmem:[%s906_s2 + $0x8] sm:$0xff]  ;;  %v659_v18 = vld [vmem:[%s908_s7 + $0x10] sm:$0xff]   ;;  %v680_v43 = vmov 2475754826  }
   0x4   :  { %621 = vmatprep.mubr.msk.bf16.mxu1 %vm675_vm0, %v674_v3  ;;  %594 = vmatpush3.bf16.msra.mxu0 %v653_v4  ;;  %v555_v13 = vld [vmem:[%s907_s1] ss:$0 sm:$0xff]  ;;  %v658_v15 = vld [vmem:[%s908_s7 + $0x8] sm:$0xff]   ;;  %v660_v25 = vld [vmem:[%s908_s7 + $0x18] sm:$0xff]   ;;  %v681_v45 = vmov 2131351028  }
   0x5   :  { %595 = vmatprep.subr.bf16.mxu0 %v674_v3  ;;  %39 = vperm.xlu1 %646, %v34_v8   ;;  %v657_v14 = vld [vmem:[%s908_s7] sm:$0xff]   ;;  %v682_v47 = vmov 2102212464   ;;  %v683_v49 = vmov 920167782  }
   0x6   :  { %124 = vperm.xlu0 %645, %v115_v2   ;;  %606 = vmatpush3.bf16.msra.mxu1 %v657_v14  ;;  %v661_v31 = vld [vmem:[%s908_s7 + $0x20] sm:$0xff]   ;;  %v684_v56 = vmov 1326507024  }
   0x7   :  { %607 = vmatprep.subr.bf16.mxu1 %v674_v3 }
   0x8   :  { %596 = vmatpush3.bf16.msra.mxu0 %v654_v5 }
   0x9   :  { %597 = vmatprep.subr.bf16.mxu0 %v674_v3  ;;  %44 = vperm.xlu1 %646, %v35_v10  }
   0xa   :  { %647 = vset.pattern.permute.xlu0 %v676_v9  ;;  %608 = vmatpush3.bf16.msra.mxu1 %v658_v15 }
   0xb   :  { %63 = vperm.xlu0 %647, %v34_v8   ;;  %609 = vmatprep.subr.bf16.mxu1 %v674_v3 }
   0xc   :  { %598 = vmatpush3.bf16.msra.mxu0 %v655_v6 }
   0xd   :  { %599 = vmatprep.subr.bf16.mxu0 %v674_v3  ;;  %648 = vset.pattern.permute.xlu1 %v676_v9 }
   0xe   :  { %67 = vperm.xlu1 %648, %v35_v10   ;;  %610 = vmatpush3.bf16.msra.mxu1 %v659_v18 }
   0xf   :  { %650 = vset.pattern.permute.xlu0 %v677_v11  ;;  %611 = vmatprep.subr.bf16.mxu1 %v674_v3 }
  0x10   :  { %600 = vmatpush3.bf16.msra.mxu0 %v656_v7  ;;  %84 = vperm.xlu0 %650, %v35_v10  }
  0x12   :  { %649 = vset.pattern.permute.xlu1 %v677_v11  ;;  %612 = vmatpush3.bf16.msra.mxu1 %v660_v25 }
  0x13   :  { %80 = vperm.xlu1 %649, %v34_v8   ;;  %613 = vmatprep.subr.bf16.mxu1 %v674_v3 }
  0x14   :  { %652 = vset.pattern.permute.xlu0 %v673_v0 }
  0x16   :  { %614 = vmatpush3.bf16.msra.mxu1 %v661_v31 }
  0x17   :  { %651 = vset.pattern.permute.xlu1 %v678_v12  ;;  %615 = vmatprep.subr.bf16.mxu1 %v674_v3 }
  0x18   :  { %97 = vperm.xlu1 %651, %v34_v8  }
  0x1c   :  { %101 = vperm.xlu1 %651, %v35_v10  }
  0x81   :  { %v120_v16 = vpop.permute.xlu0 %119 }
  0x82   :  { %v776_v17 = vmul.f32 %v555_v13, %v120_v16 }
  0x84   :  { %v135_v19 = vand.u32 2147483647, %v776_v17  ;;  %v138_v20 = vand.u32 2139095040, %v776_v17  ;;  %vm137_vm15 = vcmp.lt.s32.totalorder %v776_v17, 0 }
  0x85   :  { %v125_v21 = vpop.permute.xlu0 %124 }
  0x86   :  { %v139_v22 = vshrl.u32 %v138_v20, 23  ;;  %v784_v23 = vmul.f32 %v555_v13, %v125_v21  ;;  %v142_v24 = vand.u32 8388607, %v135_v19  ;;  %vm847_vm0 = vcmp.le.f32.partialorder %v135_v19, 0.7853982 }
  0x88   :  { %v556_v26 = vadd.s32 4294967169, %v139_v22  ;;  %v241_v27 = vand.u32 2139095040, %v784_v23  ;;  %v143_v29 = vor.u32 8388608, %v142_v24  ;;  %v238_v32 = vand.u32 2147483647, %v784_v23 }
  0x8a   :  { %v145_v28 = vadd.s32 1, %v556_v26  ;;  %v242_v30 = vshrl.u32 %v241_v27, 23  ;;  %v798_v37 = vshll.u32 %v143_v29, 8  ;;  %v245_v41 = vand.u32 8388607, %v238_v32 }
  0x8c   :  { %vm146_vm1 = vcmp.gt.s32.totalorder %v145_v28, 0  ;;  %v560_v34 = vadd.s32 4294967169, %v242_v30  ;;  %v246_v8 = vor.u32 8388608, %v245_v41 }
  0x8d   :  { %v147_v33 = vsel %vm146_vm1, %v145_v28, 0  ;;  %vm240_vm1 = vcmp.lt.s32.totalorder %v784_v23, 0 }
  0x8e   :  { %v148_v35 = vshrl.u32 %v147_v33, 5  ;;  %v149_v36 = vand.u32 31, %v147_v33  ;;  %v248_v42 = vadd.s32 1, %v560_v34  ;;  %v286_v24 = vshll.u32 %v246_v8, 8 }
  0x90   :  { %v150_v38 = vsub.s32 32, %v149_v36  ;;  %v152_v40 = vshll.u32 %v679_v39, %v149_v36  ;;  %v155_v44 = vshll.u32 %v680_v43, %v149_v36  ;;  %v158_v46 = vshll.u32 %v681_v45, %v149_v36 }
  0x91   :  { %v161_v48 = vshll.u32 %v682_v47, %v149_v36  ;;  %v164_v50 = vshll.u32 %v683_v49, %v149_v36  ;;  %vm167_vm2 = vcmp.lt.s32.totalorder %v148_v35, 1  ;;  %vm169_vm3 = vcmp.lt.s32.totalorder %v148_v35, 3 }
  0x92   :  { %v153_v51 = vshrl.u32 %v680_v43, %v150_v38  ;;  %v156_v52 = vshrl.u32 %v681_v45, %v150_v38  ;;  %v159_v53 = vshrl.u32 %v682_v47, %v150_v38  ;;  %v151_v54 = vshrl.u32 %v679_v39, %v150_v38 }
  0x93   :  { %v162_v55 = vshrl.u32 %v683_v49, %v150_v38  ;;  %v165_v57 = vshrl.u32 %v684_v56, %v150_v38  ;;  %vm249_vm4 = vcmp.gt.s32.totalorder %v248_v42, 0  ;;  %vm170_vm5 = vcmp.lt.s32.totalorder %v148_v35, 4 }
  0x94   :  { %v154_v58 = vor.u32 %v153_v51, %v152_v40  ;;  %v157_v59 = vor.u32 %v156_v52, %v155_v44  ;;  %v160_v60 = vor.u32 %v159_v53, %v158_v46  ;;  %v250_v63 = vsel %vm249_vm4, %v248_v42, 0 }
  0x95   :  { %v163_v61 = vor.u32 %v162_v55, %v161_v48  ;;  %v166_v62 = vor.u32 %v165_v57, %v164_v50  ;;  %vm168_vm6 = vcmp.lt.s32.totalorder %v148_v35, 2  ;;  %v252_v11 = vand.u32 31, %v250_v63 }
  0x96   :  { %v171_v0 = vsel %vm167_vm2, %v151_v54, %v154_v58  ;;  %v172_v1 = vsel %vm170_vm5, %v160_v60, 2102212464  ;;  %v175_v2 = vsel %vm167_vm2, %v154_v58, %v157_v59  ;;  %v179_v4 = vsel %vm167_vm2, %v157_v59, %v160_v60 }
  0x97   :  { %v173_v5 = vsel %vm169_vm3, %v157_v59, %v172_v1  ;;  %v176_v6 = vsel %vm170_vm5, %v163_v61, 920167782  ;;  %v180_v7 = vsel %vm170_vm5, %v166_v62, 1326507024  ;;  %v251_v21 = vshrl.u32 %v250_v63, 5 }
  0x98   :  { %v177_v9 = vsel %vm169_vm3, %v160_v60, %v176_v6  ;;  %v181_v10 = vsel %vm169_vm3, %v163_v61, %v180_v7  ;;  %v174_v12 = vsel %vm168_vm6, %v171_v0, %v173_v5  ;;  %v253_v22 = vsub.s32 32, %v252_v11 }
  0x99   :  { %v178_v13 = vsel %vm168_vm6, %v175_v2, %v177_v9  ;;  %v182_v14 = vsel %vm168_vm6, %v179_v4, %v181_v10  ;;  %v190_v25 = vmul.u32 %v798_v37, %v174_v12  ;;  %v255_v26 = vshll.u32 %v679_v39, %v252_v11 }
  0x9a   :  { %v812_v15 = vmul.u32.u64.low %v798_v37, %v182_v14  ;;  %v813_v16 = vmul.u32.u64.high %v798_v37, %v182_v14, %v812_v15  ;;  %v816_v18 = vmul.u32.u64.low %v798_v37, %v178_v13  ;;  %v817_v20 = vmul.u32.u64.high %v798_v37, %v178_v13, %v816_v18 }
  0x9b   :  { %v258_v27 = vshll.u32 %v680_v43, %v252_v11  ;;  %v261_v28 = vshll.u32 %v681_v45, %v252_v11  ;;  %v256_v29 = vshrl.u32 %v680_v43, %v253_v22  ;;  %v259_v30 = vshrl.u32 %v681_v45, %v253_v22 }
  0x9c   :  { %v262_v31 = vshrl.u32 %v682_v47, %v253_v22  ;;  %v264_v33 = vshll.u32 %v682_v47, %v252_v11  ;;  %vm192_vm7 = vc.u32 %v813_v16, %v816_v18  ;;  %v193_v34 = vadd.s32 1, %v817_v20 }
  0x9d   :  { %v265_v35 = vshrl.u32 %v683_v49, %v253_v22  ;;  %v267_v36 = vshll.u32 %v683_v49, %v252_v11  ;;  %v257_v38 = vor.u32 %v256_v29, %v255_v26  ;;  %v260_v40 = vor.u32 %v259_v30, %v258_v27 }
  0x9e   :  { %v263_v41 = vor.u32 %v262_v31, %v261_v28  ;;  %v268_v42 = vshrl.u32 %v684_v56, %v253_v22  ;;  %v194_v37 = vsel %vm192_vm7, %v193_v34, %v817_v20  ;;  %vm270_vm8 = vcmp.lt.s32.totalorder %v251_v21, 1 }
  0x9f   :  { %v266_v44 = vor.u32 %v265_v35, %v264_v33  ;;  %vm273_vm9 = vcmp.lt.s32.totalorder %v251_v21, 4  ;;  %v195_v43 = vadd.s32 %v194_v37, %v190_v25  ;;  %vm272_vm10 = vcmp.lt.s32.totalorder %v251_v21, 3 }
  0xa0   :  { %v269_v45 = vor.u32 %v268_v42, %v267_v36  ;;  %v275_v46 = vsel %vm273_vm9, %v263_v41, 2102212464  ;;  %v254_v47 = vshrl.u32 %v679_v39, %v253_v22  ;;  %v278_v48 = vsel %vm270_vm8, %v257_v38, %v260_v40 }
  0xa1   :  { %v279_v50 = vsel %vm273_vm9, %v266_v44, 920167782  ;;  %v282_v51 = vsel %vm270_vm8, %v260_v40, %v263_v41  ;;  %v196_v52 = vadd.s32 536870912, %v195_v43  ;;  %vm271_vm11 = vcmp.lt.s32.totalorder %v251_v21, 2 }
  0xa2   :  { %v280_v49 = vsel %vm272_vm10, %v263_v41, %v279_v50  ;;  %v283_v53 = vsel %vm273_vm9, %v269_v45, 1326507024  ;;  %v274_v54 = vsel %vm270_vm8, %v254_v47, %v257_v38  ;;  %v276_v55 = vsel %vm272_vm10, %v260_v40, %v275_v46 }
  0xa3   :  { %v281_v56 = vsel %vm271_vm11, %v278_v48, %v280_v49  ;;  %v284_v57 = vsel %vm272_vm10, %v266_v44, %v283_v53  ;;  %v827_v58 = vshrl.u32 %v196_v52, 30  ;;  %v277_v0 = vsel %vm271_vm11, %v274_v54, %v276_v55 }
  0xa4   :  { %v285_v59 = vsel %vm271_vm11, %v282_v51, %v284_v57  ;;  %v829_v60 = vmul.u32.u64.low %v286_v24, %v281_v56  ;;  %v830_v61 = vmul.u32.u64.high %v286_v24, %v281_v56, %v829_v60  ;;  %v293_v4 = vmul.u32 %v286_v24, %v277_v0 }
  0xa5   :  { %v832_v62 = vmul.u32.u64.low %v286_v24, %v285_v59  ;;  %v833_v63 = vmul.u32.u64.high %v286_v24, %v285_v59, %v832_v62  ;;  %v198_v39 = vshll.u32 %v827_v58, 30  ;;  %v191_v20 = vadd.s32 %v816_v18, %v813_v16 }
  0xa6   :  { %v296_v2 = vadd.s32 1, %v830_v61  ;;  %v221_v54 = vsub.s32 4, %v827_v58  ;;  %vm239_vm2 = vcmp.le.f32.partialorder %v238_v32, 0.7853982  ;;  %vm227_vm9 = vweird.f32 %v776_v17 }
  0xa7   :  { %v199_v1 = vsub.s32 %v195_v43, %v198_v39  ;;  %vm295_vm12 = vc.u32 %v833_v63, %v829_v60  ;;  %v294_v41 = vadd.s32 %v829_v60, %v833_v63  ;;  %vm330_vm10 = vweird.f32 %v784_v23 }
  0xa8   :  { %v297_v6 = vsel %vm295_vm12, %v296_v2, %v830_v61  ;;  %v222_v57 = vsel %vm137_vm15, %v221_v54, %v827_v58  ;;  %vm381_vm11 = vcmask 523264   ;;  %vm543_vm12 = vcmask 15360  }
  0xa9   :  { %v201_v5 = vsub.s32 0, %v199_v1  ;;  %v298_v7 = vadd.s32 %v297_v6, %v293_v4  ;;  %v224_v61 = vsel %vm847_vm0, 0, %v222_v57 }
  0xaa   :  { %v228_v0 = vand.u32 3, %v224_v61 }
  0xab   :  { %v557_v8 = vmin.u32 %v201_v5, %v199_v1  ;;  %v299_v9 = vadd.s32 536870912, %v298_v7 }
  0xac   :  { %vm230_vm3 = vcmp.eq.s32.totalorder %v228_v0, 0  ;;  %vm233_vm4 = vcmp.eq.s32.totalorder %v228_v0, 2  ;;  %vm229_vm5 = vcmp.lt.s32.totalorder %v228_v0, 2 }
  0xad   :  { %v203_v10 = vclz %v557_v8  ;;  %v300_v11 = vshrl.u32 %v299_v9, 30 }
  0xaf   :  { %v558_v12 = vadd.s32 4294967294, %v203_v10  ;;  %v301_v13 = vshll.u32 %v300_v11, 30  ;;  %v324_v56 = vsub.s32 4, %v300_v11 }
  0xb1   :  { %vm559_vm13 = vcmp.lt.s32.totalorder %v558_v12, 0  ;;  %v302_v15 = vsub.s32 %v298_v7, %v301_v13  ;;  %v325_v62 = vsel %vm240_vm1, %v324_v56, %v300_v11 }
  0xb2   :  { %v206_v14 = vsel %vm559_vm13, 0, %v558_v12  ;;  %v327_v39 = vsel %vm239_vm2, 0, %v325_v62 }
  0xb3   :  { %v207_v21 = vsub.s32 32, %v206_v14  ;;  %v211_v22 = vsub.s32 4294967266, %v206_v14  ;;  %v304_v24 = vsub.s32 0, %v302_v15  ;;  %v208_v25 = vshll.u32 %v199_v1, %v206_v14 }
  0xb4   :  { %v331_v2 = vand.u32 3, %v327_v39  ;;  %v570_v39 = vld [vmem:[%s912_s8] ss:$0 sm:$0xff] }
  0xb5   :  { %v209_v26 = vshrl.u32 %v191_v20, %v207_v21  ;;  %v212_v27 = vadd.s32 127, %v211_v22  ;;  %v561_v28 = vmin.u32 %v304_v24, %v302_v15  ;;  %v662_v20 = vld [vmem:[%s908_s7 + $0x28] sm:$0xff]   ;;  %v663_v21 = vld [vmem:[%s908_s7 + $0x30] sm:$0xff]  }
  0xb6   :  { %vm336_vm6 = vcmp.eq.s32.totalorder %v331_v2, 2  ;;  %vm333_vm7 = vcmp.eq.s32.totalorder %v331_v2, 0  ;;  %vm332_vm8 = vcmp.lt.s32.totalorder %v331_v2, 2  ;;  %616 = vmatpush3.bf16.msra.mxu1 %v662_v20 }
  0xb7   :  { %v210_v29 = vor.u32 %v209_v26, %v208_v25  ;;  %v213_v30 = vshll.u32 %v212_v27, 23  ;;  %v306_v31 = vclz %v561_v28  ;;  %617 = vmatprep.subr.bf16.mxu1 %v674_v3  ;;  %v550_v25 = vld [vmem:[%s909_s3] ss:$0 sm:$0xff]  ;;  %v64_v27 = vpop.permute.xlu0 %63 }
  0xb9   :  { %v214_v33 = vor.u32 4788187, %v213_v30  ;;  %v562_v34 = vadd.s32 4294967294, %v306_v31  ;;  %v217_v36 = vcvt.s32.f32 %v210_v29  ;;  %v551_v30 = vld [vmem:[%s910_s4] ss:$0 sm:$0xff] }
  0xba   :  { %618 = vmatpush3.bf16.msra.mxu1 %v663_v21 }
  0xbb   :  { %v215_v35 = vand.u32 2147483647, %v214_v33  ;;  %vm563_vm14 = vcmp.lt.s32.totalorder %v562_v34, 0  ;;  %619 = vmatprep.subr.bf16.mxu1 %v674_v3  ;;  %v552_v3 = vld [vmem:[%s909_s3 + $0x1] ss:$0 sm:$0xff] }
  0xbc   :  { %v309_v40 = vsel %vm563_vm14, 0, %v562_v34 }
  0xbd   :  { %v218_v38 = vmul.f32 %v217_v36, %v215_v35  ;;  %v310_v16 = vsub.s32 32, %v309_v40  ;;  %v314_v18 = vsub.s32 4294967266, %v309_v40  ;;  %v311_v37 = vshll.u32 %v302_v15, %v309_v40  ;;  %v85_v40 = vpop.permute.xlu0 %84 }
  0xbe   :  { %v74_v36 = vmul.f32 %v552_v3, %v64_v27 }
  0xbf   :  { %v219_v42 = vxor.u32 2147483648, %v218_v38  ;;  %v312_v44 = vshrl.u32 %v294_v41, %v310_v16  ;;  %v315_v43 = vadd.s32 127, %v314_v18 }
  0xc1   :  { %v220_v45 = vsel %vm137_vm15, %v219_v42, %v218_v38  ;;  %v313_v47 = vor.u32 %v312_v44, %v311_v37  ;;  %v316_v48 = vshll.u32 %v315_v43, 23  ;;  %v553_v38 = vld [vmem:[%s909_s3 + $0x2] ss:$0 sm:$0xff]  ;;  %v554_v37 = vld [vmem:[%s909_s3 + $0x3] ss:$0 sm:$0xff] }
  0xc2   :  { %v223_v50 = vsel %vm847_vm0, %v776_v17, %v220_v45  ;;  %v664_v17 = vld [vmem:[%s908_s7 + $0x38] sm:$0xff]   ;;  %v92_v42 = vmul.f32 %v553_v38, %v85_v40 }
  0xc3   :  { %v317_v51 = vor.u32 4788187, %v316_v48  ;;  %665 = vcosq.f32 %v223_v50  ;;  %v320_v49 = vcvt.s32.f32 %v313_v47  ;;  %620 = vmatpush3.bf16.msra.mxu1 %v664_v17  ;;  %v564_v48 = vld [vmem:[%s911_s6] ss:$0 sm:$0xff] }
  0xc4   :  { %667 = vsinq.f32 %v223_v50 }
  0xc5   :  { %v318_v52 = vand.u32 2147483647, %v317_v51 }
  0xc7   :  { %v321_v53 = vmul.f32 %v320_v49, %v318_v52 }
  0xc9   :  { %v322_v55 = vxor.u32 2147483648, %v321_v53 }
  0xcb   :  { %v323_v19 = vsel %vm240_vm1, %v322_v55, %v321_v53 }
  0xcc   :  { %v326_v59 = vsel %vm239_vm2, %v784_v23, %v323_v19  ;;  %v40_v23 = vpop.permute.xlu1 %39 }
  0xcd   :  { %669 = vcosq.f32 %v326_v59  ;;  %v666_v60 = vpop.eup %665  ;;  %v51_v28 = vmul.f32 %v550_v25, %v40_v23 }
  0xce   :  { %671 = vsinq.f32 %v326_v59  ;;  %v668_v63 = vpop.eup %667  ;;  %v234_v32 = vxor.u32 2147483648, %v666_v60 }
  0xcf   :  { %v231_v1 = vxor.u32 2147483648, %v668_v63  ;;  %v59_v33 = vadd.f32 %v551_v30, %v51_v28 }
  0xd0   :  { %v235_v58 = vsel %vm233_vm4, %v234_v32, %v668_v63  ;;  %v45_v22 = vpop.permute.xlu1 %44 }
  0xd1   :  { %v232_v5 = vsel %vm230_vm3, %v666_v60, %v231_v1  ;;  %v52_v29 = vmul.f32 %v550_v25, %v45_v22  ;;  %v76_v18 = vadd.f32 %v74_v36, %v59_v33 }
  0xd2   :  { %v236_v9 = vsel %vm229_vm5, %v232_v5, %v235_v58 }
  0xd3   :  { %v237_v13 = vsel %vm227_vm9, nan, %v236_v9  ;;  %v60_v34 = vadd.f32 %v551_v30, %v52_v29 }
  0xd4   :  { %v68_v24 = vpop.permute.xlu1 %67 }
  0xd5   :  { %v75_v35 = vmul.f32 %v552_v3, %v68_v24 }
  0xd7   :  { %v670_v4 = vpop.eup %669  ;;  %v77_v41 = vadd.f32 %v75_v35, %v60_v34 }
  0xd8   :  { %v672_v6 = vpop.eup %671  ;;  %v337_v7 = vxor.u32 2147483648, %v670_v4  ;;  %v81_v26 = vpop.permute.xlu1 %80 }
  0xd9   :  { %v334_v8 = vxor.u32 2147483648, %v672_v6  ;;  %v91_v16 = vmul.f32 %v553_v38, %v81_v26  ;;  %v94_v46 = vadd.f32 %v92_v42, %v77_v41 }
  0xda   :  { %v338_v10 = vsel %vm336_vm6, %v337_v7, %v672_v6 }
  0xdb   :  { %v335_v11 = vsel %vm333_vm7, %v670_v4, %v334_v8  ;;  %v93_v43 = vadd.f32 %v91_v16, %v76_v18 }
  0xdc   :  { %v339_v12 = vsel %vm332_vm8, %v335_v11, %v338_v10  ;;  %v98_v31 = vpop.permute.xlu1 %97 }
  0xdd   :  { %v340_v14 = vsel %vm330_vm10, nan, %v339_v12  ;;  %v108_v45 = vmul.f32 %v554_v37, %v98_v31 }
  0xde   :  { %v341_v15 = vpack.c.bf16 %v340_v14, %v237_v13 }
  0xdf   :  { %v110_v51 = vadd.f32 %v108_v45, %v93_v43 }
  0xe0   :  { %602 = vmatmul.mubr.msk.bf16.vlgmr.msra.gmra.mrb[0].mxu0 %vm381_vm11, %v341_v15  ;;  %v102_v44 = vpop.permute.xlu1 %101 }
  0xe1   :  { %v109_v47 = vmul.f32 %v554_v37, %v102_v44  ;;  %v112_v57 = vmax.f32 %v110_v51, 0.0 }
  0xe3   :  { %v111_v52 = vadd.f32 %v109_v47, %v94_v46 }
  0xe5   :  { %v113_v59 = vmax.f32 %v111_v52, 0.0 }
 0x1b3   :  { %v419_v50 = vpop.f32.mrb[0].mxu0 }
 0x1b4   :  { %v420_v49 = vadd.f32 %v564_v48, %v419_v50  ;;  %v603_v53 = vpop.f32.mrb[1].mxu0 }
 0x1b5   :  { %v422_v54 = vpop.f32.mrb[2].mxu0 }
 0x1b6   :  { %v426_v55 = vmax.f32 %v420_v49, 0.0  ;;  %v423_v19 = vadd.f32 %v564_v48, %v422_v54  ;;  %v604_v56 = vpop.f32.mrb[3].mxu0 }
 0x1b8   :  { %v427_v60 = vmax.f32 %v423_v19, 0.0  ;;  %v428_v61 = vmul.f32 %v426_v55, %v112_v57 }
 0x1ba   :  { %v429_v62 = vmul.f32 %v427_v60, %v113_v59 }
 0x1bc   :  { %v430_v63 = vpack.c.bf16 %v429_v62, %v428_v61 }
 0x1be   :  { %622 = vmatmul.mubr.bf16.vlgmr.msra.gmra.mrb[0].mxu1 %v430_v63 }
 0x291   :  { %v536_v0 = vpop.f32.mrb[0].mxu1 }
 0x292   :  { %v537_v1 = vadd.f32 %v570_v39, %v536_v0  ;;  %v623_v32 = vpop.f32.mrb[1].mxu1 }
 0x293   :  { %v539_v2 = vpop.f32.mrb[2].mxu1 }
 0x294   :  { %544 = vst.msk [vmem:[%s913_s9] sm:$0xff] %vm543_vm12, %v537_v1  ;;  %v540_v4 = vadd.f32 %v570_v39, %v539_v2  ;;  %v624_v5 = vpop.f32.mrb[3].mxu1 }
 0x296   :  { %545 = vst.msk [vmem:[%s913_s9 + $0x8] sm:$0xff] %vm543_vm12, %v540_v4 }

</bundles_post_ra>
